<compile_context>
chip_gen: v5e
topology: v5e:2x2
jax: 0.10.0
libtpu: 0.0.40
codegen_flags: <defaults>
</compile_context>

<pallas_src>
import jax
import jax.numpy as jnp
from jax.experimental import pallas as pl
from jax.experimental.pallas import tpu as pltpu


_ONEHOT_MAX_ROWS = 512  # beyond this, the one-hot MXU gather wastes compute/VMEM


# --------------------------------------------------------------------------- #
# Kernels
# --------------------------------------------------------------------------- #
def _cause_onehot_kernel(idx_ref,            # (2, TB) int32: row 0 = user, row 1 = item
                         ue_t_ref, ie_t_ref,  # (d_pad, n_pad) f32, VMEM-resident tables
                         o_ref):              # (1, TB) f32 predictions
    n_pad = ue_t_ref.shape[1]
    tb = idx_ref.shape[1]

    idx = idx_ref[...]                        # (2, TB)
    u_idx = idx[0:1, :]                       # (1, TB)
    i_idx = idx[1:2, :]                       # (1, TB)

    # Shared iota, computed once and reused for both one-hot compares
    # (both tables are padded to the same lane width n_pad).
    row_ids = jax.lax.broadcasted_iota(jnp.int32, (n_pad, tb), 0)
    u_oh = (row_ids == u_idx).astype(jnp.float32)   # (n_pad, TB)
    i_oh = (row_ids == i_idx).astype(jnp.float32)   # (n_pad, TB)

    # MXU gather: (d_pad, n_pad) @ (n_pad, TB) -> (d_pad, TB).
    # Padded / out-of-range indices select nothing -> prediction 0 (padded batch
    # rows are sliced off by the wrapper; genuinely invalid indices yield 0).
    ue = jnp.dot(ue_t_ref[...], u_oh, preferred_element_type=jnp.float32)
    ie = jnp.dot(ie_t_ref[...], i_oh, preferred_element_type=jnp.float32)

    # Extended dot (embedding dot + both biases) as a sublane reduce.
    # Result is lane-dense (1, TB) -> unmasked vector stores.
    o_ref[...] = jnp.sum(ue * ie, axis=0, keepdims=True)


def _cause_coldot_kernel(ue_ref, ie_ref,      # (d_pad, TB) gathered extended columns
                         o_ref):              # (1, TB)
    o_ref[...] = jnp.sum(ue_ref[...] * ie_ref[...], axis=0, keepdims=True)


# --------------------------------------------------------------------------- #
# Host-side helpers
# --------------------------------------------------------------------------- #
def prepare_cause_tables(user_e, item_e_c, user_b, item_b, *,
                         max_onehot_rows=_ONEHOT_MAX_ROWS):
    """Fold biases into extended embedding rows and build padded, transposed tables.

    Call ONCE (outside the per-step path): re-materializing padded f32 tables on
    every forward would dominate HBM traffic for repeated inference/training.
    Returns (ue_t, ie_t, use_onehot).
    """
    f32 = jnp.float32
    NU, D = user_e.shape
    NI = item_e_c.shape[0]

    ue_ext = jnp.concatenate(
        [user_e.astype(f32), user_b.astype(f32).reshape(NU, 1), jnp.ones((NU, 1), f32)],
        axis=1)
    ie_ext = jnp.concatenate(
        [item_e_c.astype(f32), jnp.ones((NI, 1), f32), item_b.astype(f32).reshape(NI, 1)],
        axis=1)

    d_ext = D + 2
    d_pad = pl.cdiv(d_ext, 8) * 8              # sublane-aligned feature axis

    use_onehot = max(NU, NI) <= max_onehot_rows
    if use_onehot:
        # Shared lane width (one in-kernel iota serves both one-hot compares).
        n_pad = max(pl.cdiv(NU, 128) * 128, pl.cdiv(NI, 128) * 128)
        ue_t = jnp.zeros((d_pad, n_pad), f32).at[:d_ext, :NU].set(ue_ext.T)
        ie_t = jnp.zeros((d_pad, n_pad), f32).at[:d_ext, :NI].set(ie_ext.T)
    else:
        # Gather path: no lane padding needed, only sublane-pad the feature axis.
        ue_t = jnp.zeros((d_pad, NU), f32).at[:d_ext, :].set(ue_ext.T)
        ie_t = jnp.zeros((d_pad, NI), f32).at[:d_ext, :].set(ie_ext.T)
    return ue_t, ie_t, use_onehot


def _pick_tb(batch, *, min_tb=256, max_tb=2048):
    """Lane-dense batch tile; aim for >= 2 grid steps (v7x megacore) when possible."""
    target = -(-batch // 2)                    # ceil(batch / 2)
    target = -(-target // 256) * 256           # round up to a multiple of 256
    return max(min_tb, min(max_tb, target))


def cause_forward(user, item, ue_t, ie_t, use_onehot, *, max_tb=2048):
    """Pallas equivalent of CausE.forward(user, item) -> shape (B,)."""
    B = user.shape[0]
    d_pad = ue_t.shape[0]
    tb = _pick_tb(B, max_tb=max_tb)
    num_blocks = pl.cdiv(B, tb)
    b_pad = num_blocks * tb

    # Pad the batch to a multiple of TB (padded rows reuse index 0, sliced off below).
    u_idx = jnp.zeros((b_pad,), jnp.int32).at[:B].set(user.astype(jnp.int32))
    i_idx = jnp.zeros((b_pad,), jnp.int32).at[:B].set(item.astype(jnp.int32))

    # Lane-dense output: (1, b_pad) with a full-extent leading dim -> no sublane-1
    # partial blocks, unmasked writeback.
    out_shape = jax.ShapeDtypeStruct((1, b_pad), jnp.float32)
    out_spec = pl.BlockSpec((1, tb), lambda i: (0, i))

    if use_onehot:
        n_pad = ue_t.shape[1]
        # Stack the two index vectors -> one input DMA per step.
        idx = jnp.stack([u_idx, i_idx], axis=0)           # (2, b_pad) int32

        # VMEM budget: tables (single-buffered) + one-hot + gathered intermediates
        # + small idx/out blocks. Cap at 64 MiB so it also fits a v7x TensorCore.
        vmem_bytes = 4 * (2 * d_pad * n_pad        # tables, Buffered(1)
                          + 2 * n_pad * tb         # one-hot intermediates
                          + 2 * d_pad * tb         # gathered (d_pad, TB) blocks
                          + 8 * tb)                # idx/out blocks (double-buffered)
        vmem_limit = int(min(64 * 2**20, max(32 * 2**20, 2 * vmem_bytes)))

        grid_spec = pltpu.PrefetchScalarGridSpec(
            num_scalar_prefetch=0,
            grid=(num_blocks,),
            in_specs=[
                # (2, tb): leading dim is the full array extent -> clean tiling.
                pl.BlockSpec((2, tb), lambda i: (0, i)),
                # Constant-index, VMEM-resident tables: single buffer is enough.
                pl.BlockSpec((d_pad, n_pad), lambda i: (0, 0),
                             pipeline_mode=pl.Buffered(1)),
                pl.BlockSpec((d_pad, n_pad), lambda i: (0, 0),
                             pipeline_mode=pl.Buffered(1)),
            ],
            out_specs=out_spec,
        )
        out = pl.pallas_call(
            _cause_onehot_kernel,
            out_shape=out_shape,
            grid_spec=grid_spec,
            compiler_params=pltpu.CompilerParams(
                dimension_semantics=("parallel",),
                vmem_limit_bytes=vmem_limit),
        )(idx, ue_t, ie_t)
    else:
        # Large-vocabulary path: real gather (columns of the transposed tables)
        # done by XLA, then a streaming column-dot kernel over lane-dense blocks.
        # TODO(synk): an in-kernel gather (scalar-prefetch indices + manual
        # make_async_copy per row) would avoid materializing the gathered columns
        # in HBM; still vastly cheaper than the one-hot matmul at large N.
        ue_cols = jnp.take(ue_t, u_idx, axis=1)           # (d_pad, b_pad)
        ie_cols = jnp.take(ie_t, i_idx, axis=1)           # (d_pad, b_pad)
        grid_spec = pltpu.PrefetchScalarGridSpec(
            num_scalar_prefetch=0,
            grid=(num_blocks,),
            in_specs=[
                pl.BlockSpec((d_pad, tb), lambda i: (0, i)),
                pl.BlockSpec((d_pad, tb), lambda i: (0, i)),
            ],
            out_specs=out_spec,
        )
        out = pl.pallas_call(
            _cause_coldot_kernel,
            out_shape=out_shape,
            grid_spec=grid_spec,
            compiler_params=pltpu.CompilerParams(
                dimension_semantics=("parallel",)),
        )(ue_cols, ie_cols)

    # torch: preds.squeeze() -> (B,)
    return out[0, :B]


def _reference_forward(user, item, user_e, item_e_c, user_b, item_b):
    ue = user_e[user]
    ie = item_e_c[item]
    preds = user_b[user] + item_b[item] + jnp.sum(ue * ie, axis=1, keepdims=True)
    return jnp.squeeze(preds)


if __name__ == "__main__":
    # Module hyper-params (small, consistent with the constructor signature).
    num_users = 32
    num_items = 48
    embedding_size = 32
    batch = 8

    key = jax.random.PRNGKey(0)
    k_ue, k_iec, k_iet, k_ub, k_ib, k_u, k_i = jax.random.split(key, 7)

    # nn.Embedding weights initialized ~ N(0, 0.1) as in _init_weights.
    user_e   = 0.1 * jax.random.normal(k_ue,  (num_users, embedding_size), dtype=jnp.float32)
    item_e_c = 0.1 * jax.random.normal(k_iec, (num_items, embedding_size), dtype=jnp.float32)
    item_e_t = 0.1 * jax.random.normal(k_iet, (num_items, embedding_size), dtype=jnp.float32)  # unused in forward
    user_b   = 0.1 * jax.random.normal(k_ub,  (num_users, 1), dtype=jnp.float32)
    item_b   = 0.1 * jax.random.normal(k_ib,  (num_items, 1), dtype=jnp.float32)

    user = jax.random.randint(k_u, (batch,), 0, num_users, dtype=jnp.int32)
    item = jax.random.randint(k_i, (batch,), 0, num_items, dtype=jnp.int32)

    # TODO(synk): calculate_loss (MSE + L2 reg between item_e_c/item_e_t) and
    # get_optimizer are training-time utilities, not the forward pass.

    # Table prep hoisted out of the per-call path: done once, reused across calls.
    ue_t, ie_t, use_onehot = prepare_cause_tables(user_e, item_e_c, user_b, item_b)

    preds = cause_forward(user, item, ue_t, ie_t, use_onehot)
    preds = jax.block_until_ready(preds)

    ref = _reference_forward(user, item, user_e, item_e_c, user_b, item_b)
    assert preds.shape == (batch,)
    assert jnp.allclose(preds, ref, rtol=1e-4, atol=1e-5), (preds, ref)

    # Also exercise the large-vocabulary (gather) fallback path for correctness.
    ue_t_g, ie_t_g, _ = prepare_cause_tables(user_e, item_e_c, user_b, item_b,
                                             max_onehot_rows=0)
    preds_g = jax.block_until_ready(
        cause_forward(user, item, ue_t_g, ie_t_g, use_onehot=False))
    assert jnp.allclose(preds_g, ref, rtol=1e-4, atol=1e-5), (preds_g, ref)

    print("KERNEL_OK")
</pallas_src>

<mosaic_0001>
module attributes {stable_mosaic.version = 11 : i64} {
  func.func @_cause_onehot_kernel(%arg0: i32, %arg1: memref<2x256xi32, #tpu.memory_space<vmem>>, %arg2: memref<40x128xf32, #tpu.memory_space<vmem>>, %arg3: memref<40x128xf32, #tpu.memory_space<vmem>>, %arg4: memref<1x256xf32, #tpu.memory_space<vmem>>) attributes {dimension_semantics = [#tpu.dimension_semantics<parallel>], iteration_bounds = array<i64: 1>, scalar_prefetch = 0 : i64, scratch_operands = 0 : i64, tpu.core_type = #tpu.core_type<tc>, window_params = [{transform_indices = @transform_0, window_bounds = array<i64: 2, 256>}, {pipeline_mode = #tpu.pipeline_mode<synchronous>, transform_indices = @transform_1, window_bounds = array<i64: 40, 128>}, {pipeline_mode = #tpu.pipeline_mode<synchronous>, transform_indices = @transform_2, window_bounds = array<i64: 40, 128>}, {transform_indices = @transform_3, window_bounds = array<i64: 1, 256>}]} {
    %c0 = arith.constant 0 : index
    %c0_0 = arith.constant 0 : index
    %0 = vector.load %arg1[%c0, %c0_0] : memref<2x256xi32, #tpu.memory_space<vmem>>, vector<2x256xi32>
    %1 = vector.extract_strided_slice %0 {offsets = [0, 0], sizes = [1, 256], strides = [1, 1]} : vector<2x256xi32> to vector<1x256xi32>
    %2 = vector.extract_strided_slice %0 {offsets = [1, 0], sizes = [1, 256], strides = [1, 1]} : vector<2x256xi32> to vector<1x256xi32>
    %3 = tpu.iota {dimensions = array<i32: 0>} : vector<128x256xi32>
    %4 = vector.broadcast %1 : vector<1x256xi32> to vector<128x256xi32>
    %5 = arith.cmpi eq, %3, %4 : vector<128x256xi32>
    %6 = arith.extui %5 : vector<128x256xi1> to vector<128x256xi32>
    %7 = arith.sitofp %6 : vector<128x256xi32> to vector<128x256xf32>
    %8 = vector.broadcast %2 : vector<1x256xi32> to vector<128x256xi32>
    %9 = arith.cmpi eq, %3, %8 : vector<128x256xi32>
    %10 = arith.extui %9 : vector<128x256xi1> to vector<128x256xi32>
    %11 = arith.sitofp %10 : vector<128x256xi32> to vector<128x256xf32>
    %c0_1 = arith.constant 0 : index
    %c0_2 = arith.constant 0 : index
    %12 = vector.load %arg2[%c0_1, %c0_2] : memref<40x128xf32, #tpu.memory_space<vmem>>, vector<40x128xf32>
    %cst = arith.constant dense<0.000000e+00> : vector<40x256xf32>
    %13 = tpu.matmul %12, %7, %cst {dimension_numbers = #tpu.dot_dimension_numbers<[1], [0], [0], [1], [0, 0, 1, 1], [], []>} : vector<40x128xf32>, vector<128x256xf32>, vector<40x256xf32> -> vector<40x256xf32>
    %c0_3 = arith.constant 0 : index
    %c0_4 = arith.constant 0 : index
    %14 = vector.load %arg3[%c0_3, %c0_4] : memref<40x128xf32, #tpu.memory_space<vmem>>, vector<40x128xf32>
    %cst_5 = arith.constant dense<0.000000e+00> : vector<40x256xf32>
    %15 = tpu.matmul %14, %11, %cst_5 {dimension_numbers = #tpu.dot_dimension_numbers<[1], [0], [0], [1], [0, 0, 1, 1], [], []>} : vector<40x128xf32>, vector<128x256xf32>, vector<40x256xf32> -> vector<40x256xf32>
    %16 = arith.mulf %13, %15 : vector<40x256xf32>
    %cst_6 = arith.constant dense<0.000000e+00> : vector<256xf32>
    %17 = vector.multi_reduction <add>, %16, %cst_6 [0] : vector<40x256xf32> to vector<256xf32>
    %18 = vector.shape_cast %17 : vector<256xf32> to vector<1x256xf32>
    %c0_7 = arith.constant 0 : index
    %c0_8 = arith.constant 0 : index
    %19 = vector.load %arg4[%c0_7, %c0_8] : memref<1x256xf32, #tpu.memory_space<vmem>>, vector<1x256xf32>
    tpu.vector_store %arg4[%c0_7, %c0_8], %18 {strides = array<i32>} : memref<1x256xf32, #tpu.memory_space<vmem>>, vector<1x256xf32>,
    return
  }
  func.func @transform_0(%arg0: i32) -> (i32, i32) {
    %c0_i32 = arith.constant 0 : i32
    %c0_i32_0 = arith.constant 0 : i32
    return %c0_i32, %arg0 : i32, i32
  }
  func.func @transform_1(%arg0: i32) -> (i32, i32) {
    %c0_i32 = arith.constant 0 : i32
    %c0_i32_0 = arith.constant 0 : i32
    %c0_i32_1 = arith.constant 0 : i32
    return %c0_i32, %c0_i32_0 : i32, i32
  }
  func.func @transform_2(%arg0: i32) -> (i32, i32) {
    %c0_i32 = arith.constant 0 : i32
    %c0_i32_0 = arith.constant 0 : i32
    %c0_i32_1 = arith.constant 0 : i32
    return %c0_i32, %c0_i32_0 : i32, i32
  }
  func.func @transform_3(%arg0: i32) -> (i32, i32) {
    %c0_i32 = arith.constant 0 : i32
    %c0_i32_0 = arith.constant 0 : i32
    return %c0_i32, %arg0 : i32, i32
  }
}

</mosaic_0001>

<bundles_post_ra>
// kernel: tpu_custom_call.1
= control target key start
LH: loop header
LB: loop body
LE: loop exit
PB: predicated region body
PF: predicated region fallthrough
CT: control target
= control target key end

     0   :  { %8 = vsyncpa [#allocation3], 0  ;;  %s910_s0 = inlined_call_operand.hbm [shape: s32[2,256], index: 0, kind: input, shape index: {}]   ;;  %s911_s1 = inlined_call_operand.hbm [shape: f32[40,128], index: 1, kind: input, shape index: {}]   ;;  %s912_s2 = inlined_call_operand.hbm [shape: f32[40,128], index: 2, kind: input, shape index: {}]   ;;  %s913_s3 = inlined_call_operand.hbm [shape: f32[1,256], index: 3, kind: output, shape index: {}]  }
   0x1   :  { %9 = vsyncpa [#allocation6], 0  ;;  %s26_s14 = sshll.u32 %s911_s1, 4  ;;  %s27_s14 = int_to_ptr.hbm [resolvable:$true] %s26_s14 }
   0x2   :  { %10 = vsyncpa [#allocation4], 0  ;;  %s712_s15 = smov [#allocation5]   ;;  %s16_s19 = sshll.u32 %s910_s0, 4  ;;  %s17_s19 = int_to_ptr.hbm [resolvable:$true] %s16_s19 }
   0x3   :  { %s28_s16 = sshll.u32 %s712_s15, 4  ;;  %s713_s20 = smov 128   ;;  %s29_s16 = int_to_ptr.vmem [resolvable:$true] %s28_s16 }
   0x4   :  { %s714_s21 = smov 8   ;;  %s715_s22 = smov [#allocation2]  }
   0x5   :  { %34 = dma.hbm_to_vmem [thread:$0]  %s27_s14, 640, %s29_s16, [#allocation6], %s713_s20, %s713_s20, %s714_s21  }
   0x6   :  { %s18_s23 = sshll.u32 %s715_s22, 4  ;;  %s39_s26 = sshll.u32 %s912_s2, 4  ;;  %s19_s23 = int_to_ptr.vmem [resolvable:$true] %s18_s23  ;;  %s40_s26 = int_to_ptr.hbm [resolvable:$true] %s39_s26 }
   0x7   :  { %21 = dma.hbm_to_vmem [thread:$0]  %s17_s19, 64, %s19_s23, [#allocation3]  }
   0x8   :  { %s716_s1 = smov [#allocation7]  }
   0x9   :  { %s41_s27 = sshll.u32 %s716_s1, 4  ;;  %s42_s27 = int_to_ptr.vmem [resolvable:$true] %s41_s27 }
   0xa   :  { %47 = dma.hbm_to_vmem [thread:$0]  %s40_s26, 640, %s42_s27, [#allocation6], %s713_s20, %s713_s20, %s714_s21  }
   0xb   :  { %706 = dma.done.wait [#allocation3], 64  }
   0xc   :  { %707 = vsyncadd [#allocation3], 4294967232 }
   0xd   :  { %708 = dma.done.wait [#allocation6], 1280  }
   0xe   :  { %709 = vsyncadd [#allocation6], 4294966016  ;;  %v61_v0 = vlaneseq  ;;  %v60_v2 = vld [vmem:[#allocation2] sm:$0xf]  ;;  %v717_v15 = vmov 1.0   ;;  %v347_v27 = vld [vmem:[#allocation7] sm:$0xff] }
   0xf   :  { %v178_v5 = vperm.slane %v60_v2, 1  ;;  %v179_v6 = vperm.slane %v60_v2, 3  ;;  %v78_v7 = vperm.slane %v60_v2, 0  ;;  %v79_v8 = vperm.slane %v60_v2, 2  ;;  %v278_v28 = vld [vmem:[#allocation5] sm:$0xff]  ;;  %v348_v29 = vld [vmem:[#allocation7 + $0x8] sm:$0xff] }
  0x10   :  { %v749_v1 = vshrl.u32 %v61_v0, 7  ;;  %v279_v30 = vld [vmem:[#allocation5 + $0x8] sm:$0xff]  ;;  %v349_v31 = vld [vmem:[#allocation7 + $0x10] sm:$0xff]  ;;  %v280_v32 = vld [vmem:[#allocation5 + $0x10] sm:$0xff]  ;;  %s718_s0 = smov [#allocation8]   ;;  %s464_s30 = sshll.u32 %s913_s3, 4  ;;  %s465_s30 = int_to_ptr.hbm [resolvable:$true] %s464_s30 }
  0x11   :  { %v754_v10 = vperm.slane %v178_v5, 1  ;;  %v756_v11 = vperm.slane %v179_v6, 1  ;;  %v758_v12 = vperm.slane %v78_v7, 0  ;;  %v760_v13 = vperm.slane %v79_v8, 0  ;;  %v350_v33 = vld [vmem:[#allocation7 + $0x18] sm:$0xff]  ;;  %v281_v34 = vld [vmem:[#allocation5 + $0x18] sm:$0xff] }
  0x12   :  { %v77_v3 = vadd.s32 120, %v749_v1  ;;  %v76_v4 = vadd.s32 112, %v749_v1  ;;  %v75_v9 = vadd.s32 104, %v749_v1  ;;  %v74_v14 = vadd.s32 96, %v749_v1  ;;  %v351_v35 = vld [vmem:[#allocation7 + $0x20] sm:$0xff]  ;;  %v282_v36 = vld [vmem:[#allocation5 + $0x20] sm:$0xff] }
  0x13   :  { %v73_v16 = vadd.s32 88, %v749_v1  ;;  %v72_v17 = vadd.s32 80, %v749_v1  ;;  %v71_v18 = vadd.s32 72, %v749_v1  ;;  %v70_v19 = vadd.s32 64, %v749_v1  ;;  %s462_s2 = sshll.u32 %s718_s0, 4  ;;  %s463_s2 = int_to_ptr.vmem [resolvable:$true] %s462_s2 }
  0x14   :  { %vm212_vm0 = vcmp.eq.s32.totalorder %v77_v3, %v754_v10  ;;  %vm213_vm1 = vcmp.eq.s32.totalorder %v77_v3, %v756_v11  ;;  %vm210_vm2 = vcmp.eq.s32.totalorder %v76_v4, %v754_v10  ;;  %vm211_vm3 = vcmp.eq.s32.totalorder %v76_v4, %v756_v11 }
  0x15   :  { %571 = vmatpush.msk.msra.mxu2 %vm212_vm0, %v717_v15  ;;  %587 = vmatpush.msk.msra.mxu3 %vm213_vm1, %v717_v15  ;;  %vm112_vm4 = vcmp.eq.s32.totalorder %v77_v3, %v758_v12  ;;  %vm208_vm5 = vcmp.eq.s32.totalorder %v75_v9, %v754_v10  ;;  %vm209_vm6 = vcmp.eq.s32.totalorder %v75_v9, %v756_v11  ;;  %v69_v20 = vadd.s32 56, %v749_v1 }
  0x16   :  { %539 = vmatpush.msk.msra.mxu0 %vm112_vm4, %v717_v15  ;;  %vm113_vm7 = vcmp.eq.s32.totalorder %v77_v3, %v760_v13  ;;  %vm110_vm8 = vcmp.eq.s32.totalorder %v76_v4, %v758_v12  ;;  %vm111_vm9 = vcmp.eq.s32.totalorder %v76_v4, %v760_v13  ;;  %vm206_vm10 = vcmp.eq.s32.totalorder %v74_v14, %v754_v10 }
  0x17   :  { %572 = vmatpush.msk.msra.mxu2 %vm210_vm2, %v717_v15  ;;  %588 = vmatpush.msk.msra.mxu3 %vm211_vm3, %v717_v15  ;;  %vm207_vm11 = vcmp.eq.s32.totalorder %v74_v14, %v756_v11  ;;  %vm108_vm12 = vcmp.eq.s32.totalorder %v75_v9, %v758_v12  ;;  %vm109_vm13 = vcmp.eq.s32.totalorder %v75_v9, %v760_v13  ;;  %v68_v21 = vadd.s32 48, %v749_v1 }
  0x18   :  { %555 = vmatpush.msk.msra.mxu1 %vm113_vm7, %v717_v15  ;;  %540 = vmatpush.msk.msra.mxu0 %vm110_vm8, %v717_v15  ;;  %vm106_vm14 = vcmp.eq.s32.totalorder %v74_v14, %v758_v12  ;;  %vm204_vm15 = vcmp.eq.s32.totalorder %v73_v16, %v754_v10  ;;  %vm205_vm0 = vcmp.eq.s32.totalorder %v73_v16, %v756_v11  ;;  %v67_v22 = vadd.s32 40, %v749_v1 }
  0x19   :  { %573 = vmatpush.msk.msra.mxu2 %vm208_vm5, %v717_v15  ;;  %589 = vmatpush.msk.msra.mxu3 %vm209_vm6, %v717_v15  ;;  %vm107_vm1 = vcmp.eq.s32.totalorder %v74_v14, %v760_v13  ;;  %vm104_vm2 = vcmp.eq.s32.totalorder %v73_v16, %v758_v12  ;;  %vm202_vm3 = vcmp.eq.s32.totalorder %v72_v17, %v754_v10  ;;  %v66_v23 = vadd.s32 32, %v749_v1 }
  0x1a   :  { %556 = vmatpush.msk.msra.mxu1 %vm111_vm9, %v717_v15  ;;  %541 = vmatpush.msk.msra.mxu0 %vm108_vm12, %v717_v15  ;;  %vm203_vm4 = vcmp.eq.s32.totalorder %v72_v17, %v756_v11  ;;  %vm105_vm5 = vcmp.eq.s32.totalorder %v73_v16, %v760_v13  ;;  %vm102_vm6 = vcmp.eq.s32.totalorder %v72_v17, %v758_v12  ;;  %v65_v24 = vadd.s32 24, %v749_v1 }
  0x1b   :  { %574 = vmatpush.msk.msra.mxu2 %vm206_vm10, %v717_v15  ;;  %590 = vmatpush.msk.msra.mxu3 %vm207_vm11, %v717_v15  ;;  %vm200_vm7 = vcmp.eq.s32.totalorder %v71_v18, %v754_v10  ;;  %vm201_vm8 = vcmp.eq.s32.totalorder %v71_v18, %v756_v11  ;;  %vm103_vm9 = vcmp.eq.s32.totalorder %v72_v17, %v760_v13  ;;  %v64_v25 = vadd.s32 16, %v749_v1 }
  0x1c   :  { %557 = vmatpush.msk.msra.mxu1 %vm109_vm13, %v717_v15  ;;  %542 = vmatpush.msk.msra.mxu0 %vm106_vm14, %v717_v15  ;;  %vm100_vm10 = vcmp.eq.s32.totalorder %v71_v18, %v758_v12  ;;  %vm198_vm11 = vcmp.eq.s32.totalorder %v70_v19, %v754_v10  ;;  %vm199_vm12 = vcmp.eq.s32.totalorder %v70_v19, %v756_v11  ;;  %v63_v26 = vadd.s32 8, %v749_v1 }
  0x1d   :  { %575 = vmatpush.msk.msra.mxu2 %vm204_vm15, %v717_v15  ;;  %591 = vmatpush.msk.msra.mxu3 %vm205_vm0, %v717_v15  ;;  %vm101_vm13 = vcmp.eq.s32.totalorder %v71_v18, %v760_v13  ;;  %vm98_vm14 = vcmp.eq.s32.totalorder %v70_v19, %v758_v12  ;;  %vm196_vm15 = vcmp.eq.s32.totalorder %v69_v20, %v754_v10 }
  0x1e   :  { %558 = vmatpush.msk.msra.mxu1 %vm107_vm1, %v717_v15  ;;  %543 = vmatpush.msk.msra.mxu0 %vm104_vm2, %v717_v15  ;;  %vm197_vm0 = vcmp.eq.s32.totalorder %v69_v20, %v756_v11  ;;  %vm99_vm1 = vcmp.eq.s32.totalorder %v70_v19, %v760_v13  ;;  %vm96_vm2 = vcmp.eq.s32.totalorder %v69_v20, %v758_v12 }
  0x1f   :  { %576 = vmatpush.msk.msra.mxu2 %vm202_vm3, %v717_v15  ;;  %592 = vmatpush.msk.msra.mxu3 %vm203_vm4, %v717_v15  ;;  %vm194_vm3 = vcmp.eq.s32.totalorder %v68_v21, %v754_v10  ;;  %vm195_vm4 = vcmp.eq.s32.totalorder %v68_v21, %v756_v11 }
  0x20   :  { %559 = vmatpush.msk.msra.mxu1 %vm105_vm5, %v717_v15  ;;  %544 = vmatpush.msk.msra.mxu0 %vm102_vm6, %v717_v15  ;;  %vm97_vm5 = vcmp.eq.s32.totalorder %v69_v20, %v760_v13  ;;  %vm94_vm6 = vcmp.eq.s32.totalorder %v68_v21, %v758_v12 }
  0x21   :  { %577 = vmatpush.msk.msra.mxu2 %vm200_vm7, %v717_v15  ;;  %593 = vmatpush.msk.msra.mxu3 %vm201_vm8, %v717_v15  ;;  %vm192_vm7 = vcmp.eq.s32.totalorder %v67_v22, %v754_v10  ;;  %vm193_vm8 = vcmp.eq.s32.totalorder %v67_v22, %v756_v11 }
  0x22   :  { %560 = vmatpush.msk.msra.mxu1 %vm103_vm9, %v717_v15  ;;  %545 = vmatpush.msk.msra.mxu0 %vm100_vm10, %v717_v15  ;;  %vm95_vm9 = vcmp.eq.s32.totalorder %v68_v21, %v760_v13  ;;  %vm92_vm10 = vcmp.eq.s32.totalorder %v67_v22, %v758_v12 }
  0x23   :  { %578 = vmatpush.msk.msra.mxu2 %vm198_vm11, %v717_v15  ;;  %594 = vmatpush.msk.msra.mxu3 %vm199_vm12, %v717_v15  ;;  %vm190_vm11 = vcmp.eq.s32.totalorder %v66_v23, %v754_v10  ;;  %vm191_vm12 = vcmp.eq.s32.totalorder %v66_v23, %v756_v11 }
  0x24   :  { %561 = vmatpush.msk.msra.mxu1 %vm101_vm13, %v717_v15  ;;  %546 = vmatpush.msk.msra.mxu0 %vm98_vm14, %v717_v15  ;;  %vm93_vm13 = vcmp.eq.s32.totalorder %v67_v22, %v760_v13  ;;  %vm90_vm14 = vcmp.eq.s32.totalorder %v66_v23, %v758_v12 }
  0x25   :  { %579 = vmatpush.msk.msra.mxu2 %vm196_vm15, %v717_v15  ;;  %595 = vmatpush.msk.msra.mxu3 %vm197_vm0, %v717_v15  ;;  %vm188_vm15 = vcmp.eq.s32.totalorder %v65_v24, %v754_v10  ;;  %vm189_vm0 = vcmp.eq.s32.totalorder %v65_v24, %v756_v11 }
  0x26   :  { %562 = vmatpush.msk.msra.mxu1 %vm99_vm1, %v717_v15  ;;  %547 = vmatpush.msk.msra.mxu0 %vm96_vm2, %v717_v15  ;;  %vm91_vm1 = vcmp.eq.s32.totalorder %v66_v23, %v760_v13  ;;  %vm88_vm2 = vcmp.eq.s32.totalorder %v65_v24, %v758_v12 }
  0x27   :  { %580 = vmatpush.msk.msra.mxu2 %vm194_vm3, %v717_v15  ;;  %596 = vmatpush.msk.msra.mxu3 %vm195_vm4, %v717_v15  ;;  %vm186_vm3 = vcmp.eq.s32.totalorder %v64_v25, %v754_v10  ;;  %vm187_vm4 = vcmp.eq.s32.totalorder %v64_v25, %v756_v11 }
  0x28   :  { %563 = vmatpush.msk.msra.mxu1 %vm97_vm5, %v717_v15  ;;  %548 = vmatpush.msk.msra.mxu0 %vm94_vm6, %v717_v15  ;;  %vm89_vm5 = vcmp.eq.s32.totalorder %v65_v24, %v760_v13  ;;  %vm86_vm6 = vcmp.eq.s32.totalorder %v64_v25, %v758_v12 }
  0x29   :  { %581 = vmatpush.msk.msra.mxu2 %vm192_vm7, %v717_v15  ;;  %597 = vmatpush.msk.msra.mxu3 %vm193_vm8, %v717_v15  ;;  %vm184_vm7 = vcmp.eq.s32.totalorder %v63_v26, %v754_v10  ;;  %vm185_vm8 = vcmp.eq.s32.totalorder %v63_v26, %v756_v11 }
  0x2a   :  { %564 = vmatpush.msk.msra.mxu1 %vm95_vm9, %v717_v15  ;;  %549 = vmatpush.msk.msra.mxu0 %vm92_vm10, %v717_v15  ;;  %vm87_vm9 = vcmp.eq.s32.totalorder %v64_v25, %v760_v13  ;;  %vm84_vm10 = vcmp.eq.s32.totalorder %v63_v26, %v758_v12 }
  0x2b   :  { %582 = vmatpush.msk.msra.mxu2 %vm190_vm11, %v717_v15  ;;  %598 = vmatpush.msk.msra.mxu3 %vm191_vm12, %v717_v15  ;;  %vm182_vm11 = vcmp.eq.s32.totalorder %v749_v1, %v754_v10  ;;  %vm183_vm12 = vcmp.eq.s32.totalorder %v749_v1, %v756_v11 }
  0x2c   :  { %565 = vmatpush.msk.msra.mxu1 %vm93_vm13, %v717_v15  ;;  %550 = vmatpush.msk.msra.mxu0 %vm90_vm14, %v717_v15  ;;  %vm85_vm13 = vcmp.eq.s32.totalorder %v63_v26, %v760_v13  ;;  %vm82_vm14 = vcmp.eq.s32.totalorder %v749_v1, %v758_v12 }
  0x2d   :  { %583 = vmatpush.msk.msra.mxu2 %vm188_vm15, %v717_v15  ;;  %599 = vmatpush.msk.msra.mxu3 %vm189_vm0, %v717_v15  ;;  %vm83_vm15 = vcmp.eq.s32.totalorder %v749_v1, %v760_v13  ;;  %vm449_vm0 = vcmask 1040384  }
  0x2e   :  { %566 = vmatpush.msk.msra.mxu1 %vm91_vm1, %v717_v15  ;;  %551 = vmatpush.msk.msra.mxu0 %vm88_vm2, %v717_v15  ;;  %vm454_vm1 = vcmp.lt.s32.totalorder %v61_v0, 256 }
  0x2f   :  { %584 = vmatpush.msk.msra.mxu2 %vm186_vm3, %v717_v15  ;;  %600 = vmatpush.msk.msra.mxu3 %vm187_vm4, %v717_v15 }
  0x30   :  { %567 = vmatpush.msk.msra.mxu1 %vm89_vm5, %v717_v15  ;;  %552 = vmatpush.msk.msra.mxu0 %vm86_vm6, %v717_v15 }
  0x31   :  { %585 = vmatpush.msk.msra.mxu2 %vm184_vm7, %v717_v15  ;;  %601 = vmatpush.msk.msra.mxu3 %vm185_vm8, %v717_v15 }
  0x32   :  { %568 = vmatpush.msk.msra.mxu1 %vm87_vm9, %v717_v15  ;;  %553 = vmatpush.msk.msra.mxu0 %vm84_vm10, %v717_v15 }
  0x33   :  { %586 = vmatpush.msk.msra.mxu2 %vm182_vm11, %v717_v15  ;;  %602 = vmatpush.msk.msra.mxu3 %vm183_vm12, %v717_v15 }
  0x34   :  { %368 = vmatmul.f32.vlgmr.msra.gmra.mxu2 %v347_v27  ;;  %400 = vmatmul.f32.vlgmr.msra.gmra.mxu3 %v347_v27 }
  0x35   :  { %569 = vmatpush.msk.msra.mxu1 %vm85_vm13, %v717_v15  ;;  %554 = vmatpush.msk.msra.mxu0 %vm82_vm14, %v717_v15 }
  0x36   :  { %299 = vmatmul.f32.vlgmr.msra.gmra.mxu0 %v278_v28 }
  0x37   :  { %570 = vmatpush.msk.msra.mxu1 %vm83_vm15, %v717_v15 }
  0x38   :  { %331 = vmatmul.f32.vlgmr.msra.gmra.mxu1 %v278_v28 }
  0x3c   :  { %371 = vmatmul.f32.gmra.mxu2 %v348_v29  ;;  %403 = vmatmul.f32.gmra.mxu3 %v348_v29 }
  0x3e   :  { %302 = vmatmul.f32.gmra.mxu0 %v279_v30 }
  0x40   :  { %334 = vmatmul.f32.gmra.mxu1 %v279_v30 }
  0x44   :  { %374 = vmatmul.f32.gmra.mxu2 %v349_v31  ;;  %406 = vmatmul.f32.gmra.mxu3 %v349_v31 }
  0x46   :  { %305 = vmatmul.f32.gmra.mxu0 %v280_v32 }
  0x48   :  { %337 = vmatmul.f32.gmra.mxu1 %v280_v32 }
  0x4c   :  { %377 = vmatmul.f32.gmra.mxu2 %v350_v33  ;;  %409 = vmatmul.f32.gmra.mxu3 %v350_v33 }
  0x4e   :  { %308 = vmatmul.f32.gmra.mxu0 %v281_v34 }
  0x50   :  { %340 = vmatmul.f32.gmra.mxu1 %v281_v34 }
  0x54   :  { %380 = vmatmul.f32.gmra.mxu2 %v351_v35  ;;  %412 = vmatmul.f32.gmra.mxu3 %v351_v35 }
  0x56   :  { %311 = vmatmul.f32.gmra.mxu0 %v282_v36 }
  0x58   :  { %343 = vmatmul.f32.gmra.mxu1 %v282_v36 }
  0xb3   :  { %v300_v37 = vpop.f32.mrf.mxu0 }
  0xb5   :  { %v332_v38 = vpop.f32.mrf.mxu1 }
  0xb7   :  { %v369_v39 = vpop.f32.mrf.mxu2  ;;  %v401_v40 = vpop.f32.mrf.mxu3 }
  0xb8   :  { %v416_v55 = vmul.f32 %v369_v39, %v300_v37  ;;  %v417_v56 = vmul.f32 %v401_v40, %v332_v38 }
  0xbb   :  { %v303_v41 = vpop.f32.mrf.mxu0 }
  0xbd   :  { %v335_v42 = vpop.f32.mrf.mxu1 }
  0xbf   :  { %v372_v43 = vpop.f32.mrf.mxu2  ;;  %v404_v44 = vpop.f32.mrf.mxu3 }
  0xc0   :  { %v418_v53 = vmul.f32 %v372_v43, %v303_v41  ;;  %v419_v54 = vmul.f32 %v404_v44, %v335_v42 }
  0xc2   :  { %v426_v59 = vadd.f32 %v418_v53, %v416_v55  ;;  %v436_v60 = vadd.f32 %v419_v54, %v417_v56 }
  0xc3   :  { %v306_v45 = vpop.f32.mrf.mxu0 }
  0xc5   :  { %v338_v46 = vpop.f32.mrf.mxu1 }
  0xc7   :  { %v375_v47 = vpop.f32.mrf.mxu2  ;;  %v407_v48 = vpop.f32.mrf.mxu3 }
  0xc8   :  { %v420_v57 = vmul.f32 %v375_v47, %v306_v45  ;;  %v421_v58 = vmul.f32 %v407_v48, %v338_v46 }
  0xca   :  { %v427_v2 = vadd.f32 %v426_v59, %v420_v57  ;;  %v437_v3 = vadd.f32 %v436_v60, %v421_v58 }
  0xcb   :  { %v309_v49 = vpop.f32.mrf.mxu0 }
  0xcd   :  { %v341_v50 = vpop.f32.mrf.mxu1 }
  0xcf   :  { %v378_v51 = vpop.f32.mrf.mxu2  ;;  %v410_v52 = vpop.f32.mrf.mxu3 }
  0xd0   :  { %v422_v61 = vmul.f32 %v378_v51, %v309_v49  ;;  %v423_v62 = vmul.f32 %v410_v52, %v341_v50 }
  0xd2   :  { %v428_v6 = vadd.f32 %v427_v2, %v422_v61  ;;  %v438_v7 = vadd.f32 %v437_v3, %v423_v62 }
  0xd3   :  { %v312_v63 = vpop.f32.mrf.mxu0 }
  0xd5   :  { %v344_v1 = vpop.f32.mrf.mxu1 }
  0xd7   :  { %v381_v4 = vpop.f32.mrf.mxu2  ;;  %v413_v5 = vpop.f32.mrf.mxu3 }
  0xd8   :  { %v424_v8 = vmul.f32 %v381_v4, %v312_v63  ;;  %v425_v9 = vmul.f32 %v413_v5, %v344_v1 }
  0xda   :  { %v429_v10 = vadd.f32 %v428_v6, %v424_v8  ;;  %v439_v11 = vadd.f32 %v438_v7, %v425_v9 }
  0xdc   :  { %v430_v12 = vrot.slane %v429_v10, 4  ;;  %v440_v13 = vrot.slane %v439_v11, 4 }
  0xde   :  { %v431_v14 = vadd.f32 %v430_v12, %v429_v10  ;;  %v441_v15 = vadd.f32 %v440_v13, %v439_v11 }
  0xe0   :  { %v432_v16 = vrot.slane %v431_v14, 2  ;;  %v442_v17 = vrot.slane %v441_v15, 2 }
  0xe2   :  { %v433_v18 = vadd.f32 %v432_v16, %v431_v14  ;;  %v443_v19 = vadd.f32 %v442_v17, %v441_v15 }
  0xe4   :  { %v434_v20 = vrot.slane %v433_v18, 1  ;;  %v444_v21 = vrot.slane %v443_v19, 1 }
  0xe6   :  { %v445_v22 = vadd.f32 %v444_v21, %v443_v19  ;;  %v435_v23 = vadd.f32 %v434_v20, %v433_v18 }
  0xe8   :  { %v448_v24 = vrot.slane %v445_v22, 7 }
  0xea   :  { %v450_v25 = vsel %vm449_vm0, %v435_v23, %v448_v24 }
  0xeb   :  { %456 = vst.msk [vmem:[#allocation8] sm:$0x3] %vm454_vm1, %v450_v25 }
  0xec   :  { %467 = dma.vmem_to_hbm [thread:$0]  %s463_s2, 32, %s465_s30, [#allocation4]  }
  0xed   :  { %710 = dma.done.wait [#allocation4], 32  }
  0xee   :  { %711 = vsyncadd [#allocation4], 4294967264 }
  0xef   :  { %472 = vsyncpa [#allocation3], 1 }
  0xf0   :  { %473 = vsyncpa [#allocation6], 1 }
  0xf1   :  { %474 = vsyncpa [#allocation4], 1 }

</bundles_post_ra>
